<compile_context>
chip_gen: v5e
topology: v5e:2x2
jax: 0.10.0
libtpu: 0.0.40
codegen_flags: <defaults>
</compile_context>

<pallas_src>
import jax
import jax.numpy as jnp
from jax.experimental import pallas as pl
from jax.experimental.pallas import tpu as pltpu


def conv1x1_elementwise_kernel(wb_ref, x_ref, o_ref):
    # wb_ref: VMEM (C_out, C_in + 1)  -- cols [0, C_in) = weights, col C_in = bias
    # x_ref : VMEM (C_in, HW_tile)    -- lane dim = flattened padded spatial
    # o_ref : VMEM (C_out, HW_tile)
    c_in, _ = x_ref.shape
    wb = wb_ref[...]                                   # tiny, loaded once
    x = x_ref[...]

    # v1 = sum_ci w[:, ci] * x[ci, :] + bias   (full (C_out, HW) tile on the VPU)
    acc = wb[:, 0:1] * x[0:1, :]
    for ci in range(1, c_in):                          # C_in = 3, unrolled
        acc = acc + wb[:, ci:ci + 1] * x[ci:ci + 1, :]
    v1 = acc + wb[:, c_in:c_in + 1]

    # elementwise chain: (+3, floor, *, round, -6); one dense lane-aligned store
    v3 = jnp.floor(v1 + 3.0)
    o_ref[...] = (jnp.round(v1 * v3) - 6.0).astype(o_ref.dtype)


def model_forward(x_nchw, weight, bias, *, padding=2, max_lanes_per_step=32768):
    """x_nchw: (N, C_in, H, W) f32; weight: (C_out, C_in, 1, 1); bias: (C_out,)."""
    n, c_in, h, w = x_nchw.shape
    c_out = weight.shape[0]
    h_out, w_out = h + 2 * padding, w + 2 * padding
    hwp = h_out * w_out

    # Zero-pad the (cheap, C_in=3) input spatially; the bias-only conv border
    # then falls out of the kernel automatically.  Flatten spatial -> lane dim.
    x_pad = jnp.pad(x_nchw, ((0, 0), (0, 0),
                             (padding, padding), (padding, padding)))
    x_rows = x_pad.reshape(n, c_in, hwp)

    # Lane-tile selection: one step per image when small, otherwise lane tiles
    # of max_lanes_per_step (multiple of 128) with zero padding on the tail.
    if hwp <= max_lanes_per_step:
        hw_tile = hwp
        hw_total = hwp
    else:
        hw_tile = max_lanes_per_step
        hw_total = pl.cdiv(hwp, hw_tile) * hw_tile
        x_rows = jnp.pad(x_rows, ((0, 0), (0, 0), (0, hw_total - hwp)))
    num_tiles = hw_total // hw_tile

    # (C_out, C_in + 1): weights with the bias appended as the last column.
    wb = jnp.concatenate(
        [weight.reshape(c_out, c_in), bias.reshape(c_out, 1)], axis=1)

    out = pl.pallas_call(
        conv1x1_elementwise_kernel,
        out_shape=jax.ShapeDtypeStruct((n, c_out, hw_total), jnp.float32),
        grid_spec=pltpu.PrefetchScalarGridSpec(
            num_scalar_prefetch=0,
            grid=(n, num_tiles),
            in_specs=[
                pl.BlockSpec((c_out, c_in + 1), lambda b, t: (0, 0)),     # w+b
                pl.BlockSpec((None, c_in, hw_tile), lambda b, t: (b, 0, t)),
            ],
            out_specs=pl.BlockSpec((None, c_out, hw_tile),
                                   lambda b, t: (b, 0, t)),
        ),
        compiler_params=pltpu.CompilerParams(
            dimension_semantics=("parallel", "parallel")),
    )(wb, x_rows)

    if hw_total != hwp:
        out = out[:, :, :hwp]
    return out.reshape(n, c_out, h_out, w_out)


if __name__ == "__main__":
    key = jax.random.PRNGKey(0)
    k_x, k_w, k_b = jax.random.split(key, 3)

    # small shapes consistent with the module: Conv2d(3, 16, 1, padding=2)
    N, C_IN, H, W = 2, 3, 16, 16
    C_OUT = 16
    PAD = 2

    x1 = jax.random.normal(k_x, (N, C_IN, H, W), dtype=jnp.float32)
    # deterministic Conv2d-style init (uniform in +/- 1/sqrt(fan_in))
    fan_in = C_IN * 1 * 1
    bound = 1.0 / (fan_in ** 0.5)
    weight = jax.random.uniform(k_w, (C_OUT, C_IN, 1, 1),
                                minval=-bound, maxval=bound,
                                dtype=jnp.float32)
    bias = jax.random.uniform(k_b, (C_OUT,),
                              minval=-bound, maxval=bound,
                              dtype=jnp.float32)

    fwd = jax.jit(model_forward, static_argnames=("padding",))
    out = jax.block_until_ready(fwd(x1, weight, bias, padding=PAD))

    # Reference in plain JAX, using the SAME accumulation order as the kernel
    # (sum of w_ci * x_ci, then + bias) so floor/round boundary flips from
    # ulp-level reassociation cannot cause spurious mismatches.
    x_pad = jnp.pad(x1, ((0, 0), (0, 0), (PAD, PAD), (PAD, PAD)))
    w2d = weight.reshape(C_OUT, C_IN)
    v1 = w2d[:, 0][None, :, None, None] * x_pad[:, 0:1]
    for ci in range(1, C_IN):
        v1 = v1 + w2d[:, ci][None, :, None, None] * x_pad[:, ci:ci + 1]
    v1 = v1 + bias[None, :, None, None]
    ref = jnp.round(v1 * jnp.floor(v1 + 3.0)) - 6.0

    assert out.shape == (N, C_OUT, H + 2 * PAD, W + 2 * PAD)
    assert jnp.allclose(out, ref, atol=1e-4, rtol=1e-4)

    print("KERNEL_OK")
</pallas_src>

<mosaic_0001>
module attributes {stable_mosaic.version = 11 : i64} {
  func.func @conv1x1_elementwise_kernel(%arg0: i32, %arg1: i32, %arg2: memref<16x4xf32, #tpu.memory_space<vmem>>, %arg3: memref<1x3x400xf32, #tpu.memory_space<vmem>>, %arg4: memref<1x16x400xf32, #tpu.memory_space<vmem>>) attributes {dimension_semantics = [#tpu.dimension_semantics<parallel>, #tpu.dimension_semantics<parallel>], iteration_bounds = array<i64: 2, 1>, scalar_prefetch = 0 : i64, scratch_operands = 0 : i64, tpu.core_type = #tpu.core_type<tc>, window_params = [{pipeline_mode = #tpu.pipeline_mode<synchronous>, transform_indices = @transform_0, window_bounds = array<i64: 16, 4>}, {transform_indices = @transform_1, window_bounds = array<i64: 1, 3, 400>}, {transform_indices = @transform_2, window_bounds = array<i64: 1, 16, 400>}]} {
    %c0 = arith.constant 0 : index
    %c0_0 = arith.constant 0 : index
    %0 = vector.load %arg2[%c0, %c0_0] : memref<16x4xf32, #tpu.memory_space<vmem>>, vector<16x4xf32>
    %c0_1 = arith.constant 0 : index
    %c0_2 = arith.constant 0 : index
    %c0_3 = arith.constant 0 : index
    %1 = vector.load %arg3[%c0_1, %c0_2, %c0_3] : memref<1x3x400xf32, #tpu.memory_space<vmem>>, vector<1x3x400xf32>
    %2 = vector.shape_cast %1 : vector<1x3x400xf32> to vector<3x400xf32>
    %3 = vector.extract_strided_slice %0 {offsets = [0, 0], sizes = [16, 1], strides = [1, 1]} : vector<16x4xf32> to vector<16x1xf32>
    %4 = vector.extract_strided_slice %2 {offsets = [0, 0], sizes = [1, 400], strides = [1, 1]} : vector<3x400xf32> to vector<1x400xf32>
    %5 = vector.broadcast %3 : vector<16x1xf32> to vector<16x400xf32>
    %6 = vector.broadcast %4 : vector<1x400xf32> to vector<16x400xf32>
    %7 = arith.mulf %5, %6 : vector<16x400xf32>
    %8 = vector.extract_strided_slice %0 {offsets = [0, 1], sizes = [16, 1], strides = [1, 1]} : vector<16x4xf32> to vector<16x1xf32>
    %9 = vector.extract_strided_slice %2 {offsets = [1, 0], sizes = [1, 400], strides = [1, 1]} : vector<3x400xf32> to vector<1x400xf32>
    %10 = vector.broadcast %8 : vector<16x1xf32> to vector<16x400xf32>
    %11 = vector.broadcast %9 : vector<1x400xf32> to vector<16x400xf32>
    %12 = arith.mulf %10, %11 : vector<16x400xf32>
    %13 = arith.addf %7, %12 : vector<16x400xf32>
    %14 = vector.extract_strided_slice %0 {offsets = [0, 2], sizes = [16, 1], strides = [1, 1]} : vector<16x4xf32> to vector<16x1xf32>
    %15 = vector.extract_strided_slice %2 {offsets = [2, 0], sizes = [1, 400], strides = [1, 1]} : vector<3x400xf32> to vector<1x400xf32>
    %16 = vector.broadcast %14 : vector<16x1xf32> to vector<16x400xf32>
    %17 = vector.broadcast %15 : vector<1x400xf32> to vector<16x400xf32>
    %18 = arith.mulf %16, %17 : vector<16x400xf32>
    %19 = arith.addf %13, %18 : vector<16x400xf32>
    %20 = vector.extract_strided_slice %0 {offsets = [0, 3], sizes = [16, 1], strides = [1, 1]} : vector<16x4xf32> to vector<16x1xf32>
    %21 = vector.broadcast %20 : vector<16x1xf32> to vector<16x400xf32>
    %22 = arith.addf %19, %21 : vector<16x400xf32>
    %cst = arith.constant 3.000000e+00 : f32
    %23 = vector.broadcast %cst : f32 to vector<16x400xf32>
    %24 = arith.addf %22, %23 : vector<16x400xf32>
    %25 = math.floor %24 : vector<16x400xf32>
    %26 = arith.mulf %22, %25 : vector<16x400xf32>
    %27 = math.roundeven %26 : vector<16x400xf32>
    %cst_4 = arith.constant 6.000000e+00 : f32
    %28 = vector.broadcast %cst_4 : f32 to vector<16x400xf32>
    %29 = arith.subf %27, %28 : vector<16x400xf32>
    %c0_5 = arith.constant 0 : index
    %c0_6 = arith.constant 0 : index
    %c0_7 = arith.constant 0 : index
    %30 = vector.load %arg4[%c0_5, %c0_6, %c0_7] : memref<1x16x400xf32, #tpu.memory_space<vmem>>, vector<1x16x400xf32>
    %31 = vector.shape_cast %30 : vector<1x16x400xf32> to vector<16x400xf32>
    %32 = vector.shape_cast %29 : vector<16x400xf32> to vector<1x16x400xf32>
    tpu.vector_store %arg4[%c0_5, %c0_6, %c0_7], %32 {strides = array<i32>} : memref<1x16x400xf32, #tpu.memory_space<vmem>>, vector<1x16x400xf32>,
    return
  }
  func.func @transform_0(%arg0: i32, %arg1: i32) -> (i32, i32) {
    %c0_i32 = arith.constant 0 : i32
    %c0_i32_0 = arith.constant 0 : i32
    %c0_i32_1 = arith.constant 0 : i32
    return %c0_i32, %c0_i32_0 : i32, i32
  }
  func.func @transform_1(%arg0: i32, %arg1: i32) -> (i32, i32, i32) {
    %c0_i32 = arith.constant 0 : i32
    %c0_i32_0 = arith.constant 0 : i32
    return %arg0, %c0_i32, %arg1 : i32, i32, i32
  }
  func.func @transform_2(%arg0: i32, %arg1: i32) -> (i32, i32, i32) {
    %c0_i32 = arith.constant 0 : i32
    %c0_i32_0 = arith.constant 0 : i32
    return %arg0, %c0_i32, %arg1 : i32, i32, i32
  }
}

</mosaic_0001>

<bundles_post_ra>
// kernel: model_forward.1
= control target key start
LH: loop header
LB: loop body
LE: loop exit
PB: predicated region body
PF: predicated region fallthrough
CT: control target
= control target key end

     0   :  { %s604_s9 = smov 0   ;;  %s606_s10 = smov 0   ;;  %s711_s0 = inlined_call_operand.vmem [shape: f32[16,4], index: 0, kind: input, shape index: {}]   ;;  %s712_s1 = inlined_call_operand.vmem [shape: f32[2,3,400], index: 1, kind: input, shape index: {}]   ;;  %s713_s2 = inlined_call_operand.vmem [shape: f32[2,16,400], index: 2, kind: output, shape index: {}]  }
   0x1   :  { %s608_s11 = smov 0  }
   0x2 LB: > { %s24_s12 = sadd.s32 1, %s579_s10  ;;  %p447_p0 = scmp.ge.s32.totalorder %s583_s11, 1  ;;  %s583_s11 = sphi %s608_s11, %s12_s11   ;;  %s579_s10 = sphi %s606_s10, %s723_s10   ;;  %s575_s9 = sphi %s604_s9, %s722_s9  }
   0x3   : > { %p26_p1 = scmp.ge.s32.totalorder %s24_s12, 2  ;;  %p133_p2 = scmp.lt.s32.totalorder %s583_s11, 3 }
   0x5   : > { %s725_s12 = smov (%p26_p1, %s24_s12), 0  ;;  %p134_p3 = pnand %p447_p0, %p133_p2 }
   0x6   : > { %p164_p4 = scmp.lt.s32.totalorder (!%p134_p3), %s575_s9, 1 }
   0x7   : > { %137 = sbr.rel (%p134_p3) target bundleno = 178 (0xb2), region = 28 }
   0xc   : > { %v183_v0 = vld [vmem:[%s711_s0] sm:$0xff]  ;;  %v585_v1 = vmov 1   ;;  %v586_v2 = vmov 0   ;;  %v587_v3 = vmov 2   ;;  %v184_v4 = vld [vmem:[%s711_s0 + $0x8] sm:$0xff]  ;;  %v588_v5 = vmov 3  }
   0xd   : > { %557 = vset.pattern.permute.xlu1 %v585_v1  ;;  %556 = vset.pattern.permute.xlu0 %v586_v2  ;;  %s727_s9 = smov (!%p164_p4, %s575_s9), 1  ;;  %vm350_vm4 = vcmask 130048  }
   0xe   : > { %220 = vperm.xlu1 %557, %v183_v0   ;;  %189 = vperm.xlu0 %556, %v183_v0   ;;  %s462_s17 = sshll.u32 %s727_s9, 4  ;;  %s463_s21 = sshll.u32 %s727_s9, 6 }
   0xf   : > { %558 = vset.pattern.permute.xlu2 %v587_v3  ;;  %s171_s20 = scalar_lea.vmem %s712_s1, %s462_s17  ;;  %s664_s24 = scalar_lea.vmem %s713_s2, %s463_s21 }
  0x10   : > { %256 = vperm.xlu2 %558, %v183_v0   ;;  %v185_v6 = vld [vmem:[%s171_s20] sm:$0x77]  ;;  %v186_v7 = vld [vmem:[%s171_s20 + $0x8] sm:$0x77] }
  0x11   : > { %v227_v8 = vperm.slane %v185_v6, 1  ;;  %v228_v9 = vperm.slane %v185_v6, 5  ;;  %v229_v10 = vperm.slane %v186_v7, 1  ;;  %v230_v11 = vperm.slane %v186_v7, 5 }
  0x12   : > { %v199_v14 = vperm.slane %v185_v6, 0  ;;  %v200_v15 = vperm.slane %v185_v6, 4  ;;  %v201_v16 = vperm.slane %v186_v7, 0  ;;  %v202_v17 = vperm.slane %v186_v7, 4 }
  0x13   : > { %v263_v19 = vperm.slane %v185_v6, 2  ;;  %v264_v20 = vperm.slane %v185_v6, 6  ;;  %v265_v21 = vperm.slane %v186_v7, 2  ;;  %v266_v22 = vperm.slane %v186_v7, 6 }
  0x14   : > { %v235_v23 = vperm.slane %v227_v8, 1  ;;  %v236_v24 = vperm.slane %v228_v9, 1  ;;  %v237_v25 = vperm.slane %v229_v10, 1  ;;  %v238_v26 = vperm.slane %v230_v11, 1 }
  0x15   : > { %v207_v27 = vperm.slane %v199_v14, 0  ;;  %v208_v28 = vperm.slane %v200_v15, 0  ;;  %v209_v29 = vperm.slane %v201_v16, 0  ;;  %v210_v30 = vperm.slane %v202_v17, 0 }
  0x16   : > { %224 = vperm.xlu1 %557, %v184_v4   ;;  %194 = vperm.xlu0 %556, %v184_v4   ;;  %v271_v31 = vperm.slane %v263_v19, 2  ;;  %v272_v32 = vperm.slane %v264_v20, 2  ;;  %v273_v33 = vperm.slane %v265_v21, 2  ;;  %v274_v34 = vperm.slane %v266_v22, 2 }
  0x18   : > { %260 = vperm.xlu2 %558, %v184_v4  }
  0x1e   : > { %560 = vset.pattern.permute.xlu1 %v588_v5  ;;  %559 = vset.pattern.permute.xlu0 %v588_v5 }
  0x1f   : > { %296 = vperm.xlu1 %560, %v184_v4   ;;  %292 = vperm.xlu0 %559, %v183_v0  }
  0x6a   : > { %v257_v18 = vpop.permute.xlu2 %256 }
  0x6b   : > { %v275_v54 = vmul.f32 %v271_v31, %v257_v18  ;;  %v276_v55 = vmul.f32 %v272_v32, %v257_v18  ;;  %v277_v56 = vmul.f32 %v273_v33, %v257_v18  ;;  %v278_v57 = vmul.f32 %v274_v34, %v257_v18 }
  0x72   : > { %v261_v53 = vpop.permute.xlu2 %260 }
  0x73   : > { %v279_v2 = vmul.f32 %v271_v31, %v261_v53  ;;  %v280_v3 = vmul.f32 %v272_v32, %v261_v53  ;;  %v281_v4 = vmul.f32 %v273_v33, %v261_v53  ;;  %v282_v5 = vmul.f32 %v274_v34, %v261_v53 }
  0x80   : > { %v221_v12 = vpop.permute.xlu1 %220  ;;  %v190_v13 = vpop.permute.xlu0 %189 }
  0x81   : > { %v239_v35 = vmul.f32 %v235_v23, %v221_v12  ;;  %v240_v36 = vmul.f32 %v236_v24, %v221_v12  ;;  %v241_v37 = vmul.f32 %v237_v25, %v221_v12  ;;  %v242_v38 = vmul.f32 %v238_v26, %v221_v12 }
  0x82   : > { %v211_v39 = vmul.f32 %v207_v27, %v190_v13  ;;  %v212_v40 = vmul.f32 %v208_v28, %v190_v13  ;;  %v213_v41 = vmul.f32 %v209_v29, %v190_v13  ;;  %v214_v42 = vmul.f32 %v210_v30, %v190_v13 }
  0x84   : > { %v247_v62 = vadd.f32 %v239_v35, %v211_v39  ;;  %v248_v63 = vadd.f32 %v240_v36, %v212_v40  ;;  %v249_v0 = vadd.f32 %v241_v37, %v213_v41  ;;  %v250_v1 = vadd.f32 %v242_v38, %v214_v42 }
  0x86   : > { %v283_v12 = vadd.f32 %v275_v54, %v247_v62  ;;  %v284_v13 = vadd.f32 %v276_v55, %v248_v63  ;;  %v285_v14 = vadd.f32 %v277_v56, %v249_v0  ;;  %v286_v15 = vadd.f32 %v278_v57, %v250_v1 }
  0x88   : > { %v225_v43 = vpop.permute.xlu1 %224  ;;  %v195_v44 = vpop.permute.xlu0 %194 }
  0x89   : > { %v243_v45 = vmul.f32 %v235_v23, %v225_v43  ;;  %v244_v46 = vmul.f32 %v236_v24, %v225_v43  ;;  %v245_v47 = vmul.f32 %v237_v25, %v225_v43  ;;  %v246_v48 = vmul.f32 %v238_v26, %v225_v43 }
  0x8a   : > { %v215_v49 = vmul.f32 %v207_v27, %v195_v44  ;;  %v216_v50 = vmul.f32 %v208_v28, %v195_v44  ;;  %v217_v51 = vmul.f32 %v209_v29, %v195_v44  ;;  %v218_v52 = vmul.f32 %v210_v30, %v195_v44 }
  0x8c   : > { %v251_v58 = vadd.f32 %v243_v45, %v215_v49  ;;  %v252_v59 = vadd.f32 %v244_v46, %v216_v50  ;;  %v253_v60 = vadd.f32 %v245_v47, %v217_v51  ;;  %v254_v61 = vadd.f32 %v246_v48, %v218_v52 }
  0x8e   : > { %v287_v6 = vadd.f32 %v279_v2, %v251_v58  ;;  %v288_v7 = vadd.f32 %v280_v3, %v252_v59  ;;  %v289_v8 = vadd.f32 %v281_v4, %v253_v60  ;;  %v290_v9 = vadd.f32 %v282_v5, %v254_v61 }
  0x91   : > { %v297_v10 = vpop.permute.xlu1 %296  ;;  %v293_v11 = vpop.permute.xlu0 %292 }
  0x92   : > { %v303_v16 = vadd.f32 %v297_v10, %v287_v6  ;;  %v304_v17 = vadd.f32 %v297_v10, %v288_v7  ;;  %v305_v18 = vadd.f32 %v297_v10, %v289_v8  ;;  %v306_v19 = vadd.f32 %v297_v10, %v290_v9 }
  0x93   : > { %v299_v20 = vadd.f32 %v293_v11, %v283_v12  ;;  %v300_v21 = vadd.f32 %v293_v11, %v284_v13  ;;  %v301_v22 = vadd.f32 %v293_v11, %v285_v14  ;;  %v302_v23 = vadd.f32 %v293_v11, %v286_v15 }
  0x94   : > { %v311_v24 = vadd.f32 3.0, %v303_v16  ;;  %v312_v25 = vadd.f32 3.0, %v304_v17  ;;  %v313_v26 = vadd.f32 3.0, %v305_v18  ;;  %v314_v27 = vadd.f32 3.0, %v306_v19 }
  0x95   : > { %v307_v28 = vadd.f32 3.0, %v299_v20  ;;  %v308_v29 = vadd.f32 3.0, %v300_v21  ;;  %v309_v30 = vadd.f32 3.0, %v301_v22  ;;  %v310_v31 = vadd.f32 3.0, %v302_v23 }
  0x96   : > { %v319_v32 = vfloor.f32 %v311_v24  ;;  %v320_v33 = vfloor.f32 %v312_v25  ;;  %v321_v34 = vfloor.f32 %v313_v26  ;;  %v322_v35 = vfloor.f32 %v314_v27 }
  0x97   : > { %v315_v36 = vfloor.f32 %v307_v28  ;;  %v316_v37 = vfloor.f32 %v308_v29  ;;  %v317_v38 = vfloor.f32 %v309_v30  ;;  %v318_v42 = vfloor.f32 %v310_v31 }
  0x98   : > { %v327_v39 = vmul.f32 %v319_v32, %v303_v16  ;;  %v328_v40 = vmul.f32 %v320_v33, %v304_v17  ;;  %v329_v41 = vmul.f32 %v321_v34, %v305_v18  ;;  %v330_v43 = vmul.f32 %v322_v35, %v306_v19 }
  0x99   : > { %v638_v47 = vmul.f32 %v315_v36, %v299_v20  ;;  %v640_v51 = vmul.f32 %v316_v37, %v300_v21  ;;  %v642_v54 = vmul.f32 %v317_v38, %v301_v22  ;;  %v644_v55 = vmul.f32 %v318_v42, %v302_v23 }
  0x9a   : > { %v496_v44 = vand.u32 2147483647, %v327_v39  ;;  %v498_v45 = vcvt.f32.s32 %v327_v39  ;;  %v504_v46 = vand.u32 2147483647, %v328_v40  ;;  %v506_v48 = vcvt.f32.s32 %v328_v40 }
  0x9b   : > { %v512_v49 = vand.u32 2147483647, %v329_v41  ;;  %v514_v50 = vcvt.f32.s32 %v329_v41  ;;  %v501_v53 = vand.u32 2147483648, %v327_v39  ;;  %v509_v58 = vand.u32 2147483648, %v328_v40 }
  0x9c   : > { %v499_v52 = vcvt.s32.f32 %v498_v45  ;;  %vm646_vm0 = vcmp.lt.f32.partialorder %v496_v44, 8388608.0  ;;  %v507_v57 = vcvt.s32.f32 %v506_v48  ;;  %vm650_vm1 = vcmp.lt.f32.partialorder %v504_v46, 8388608.0 }
  0x9d   : > { %v515_v59 = vcvt.s32.f32 %v514_v50  ;;  %v517_v62 = vand.u32 2147483648, %v329_v41  ;;  %v522_v63 = vcvt.f32.s32 %v330_v43  ;;  %vm655_vm2 = vcmp.lt.f32.partialorder %v512_v49, 8388608.0 }
  0x9e   : > { %v500_v60 = vand.u32 2147483647, %v499_v52  ;;  %v508_v0 = vand.u32 2147483647, %v507_v57  ;;  %v466_v3 = vcvt.f32.s32 %v638_v47  ;;  %v520_v5 = vand.u32 2147483647, %v330_v43 }
  0x9f   : > { %v516_v2 = vand.u32 2147483647, %v515_v59  ;;  %v523_v6 = vcvt.s32.f32 %v522_v63  ;;  %v525_v7 = vand.u32 2147483648, %v330_v43  ;;  %v464_v10 = vand.u32 2147483647, %v638_v47 }
  0xa0   : > { %v502_v4 = vor.u32 %v501_v53, %v500_v60  ;;  %v510_v8 = vor.u32 %v509_v58, %v508_v0  ;;  %v467_v11 = vcvt.s32.f32 %v466_v3  ;;  %v469_v14 = vand.u32 2147483648, %v638_v47 }
  0xa1   : > { %v518_v9 = vor.u32 %v517_v62, %v516_v2  ;;  %v524_v13 = vand.u32 2147483647, %v523_v6  ;;  %v474_v15 = vcvt.f32.s32 %v640_v51  ;;  %v472_v23 = vand.u32 2147483647, %v640_v51 }
  0xa2   : > { %v503_v12 = vsel %vm646_vm0, %v502_v4, %v327_v39  ;;  %v511_v16 = vsel %vm650_vm1, %v510_v8, %v328_v40  ;;  %v468_v19 = vand.u32 2147483647, %v467_v11  ;;  %vm521_vm3 = vcmp.lt.f32.partialorder %v520_v5, 8388608.0 }
  0xa3   : > { %v519_v17 = vsel %vm655_vm2, %v518_v9, %v329_v41  ;;  %v456_v18 = vadd.f32 -6.0, %v503_v12  ;;  %v526_v20 = vor.u32 %v525_v7, %v524_v13  ;;  %v457_v21 = vadd.f32 -6.0, %v511_v16 }
  0xa4   : > { %v458_v22 = vadd.f32 -6.0, %v519_v17  ;;  %v470_v24 = vor.u32 %v469_v14, %v468_v19  ;;  %v475_v25 = vcvt.s32.f32 %v474_v15  ;;  %v482_v26 = vcvt.f32.s32 %v642_v54 }
  0xa5   : > { %352 = vst [vmem:[%s664_s24 + $0x20] sm:$0xff] %v456_v18  ;;  %v527_v27 = vsel %vm521_vm3, %v526_v20, %v330_v43  ;;  %vm465_vm5 = vcmp.lt.f32.partialorder %v464_v10, 8388608.0  ;;  %v490_v28 = vcvt.f32.s32 %v644_v55  ;;  %v477_v32 = vand.u32 2147483648, %v640_v51 }
  0xa6   : > { %353 = vst [vmem:[%s664_s24 + $0x28] sm:$0xff] %v457_v21  ;;  %v459_v29 = vadd.f32 -6.0, %v527_v27  ;;  %v471_v30 = vsel %vm465_vm5, %v470_v24, %v638_v47  ;;  %v476_v31 = vand.u32 2147483647, %v475_v25  ;;  %vm682_vm6 = vcmp.lt.f32.partialorder %v472_v23, 8388608.0 }
  0xa7   : > { %354 = vst [vmem:[%s664_s24 + $0x30] sm:$0xff] %v458_v22  ;;  %v483_v34 = vcvt.s32.f32 %v482_v26  ;;  %v491_v35 = vcvt.s32.f32 %v490_v28  ;;  %v480_v37 = vand.u32 2147483647, %v642_v54  ;;  %v488_v38 = vand.u32 2147483647, %v644_v55 }
  0xa8   : > { %355 = vst.msk [vmem:[%s664_s24 + $0x38] sm:$0xff] %vm350_vm4, %v459_v29  ;;  %v478_v36 = vor.u32 %v477_v32, %v476_v31  ;;  %v452_v39 = vadd.f32 -6.0, %v471_v30  ;;  %v485_v41 = vand.u32 2147483648, %v642_v54  ;;  %v493_v43 = vand.u32 2147483648, %v644_v55 }
  0xa9   : > { %v484_v40 = vand.u32 2147483647, %v483_v34  ;;  %v492_v42 = vand.u32 2147483647, %v491_v35  ;;  %vm481_vm7 = vcmp.lt.f32.partialorder %v480_v37, 8388608.0  ;;  %vm489_vm8 = vcmp.lt.f32.partialorder %v488_v38, 8388608.0 }
  0xaa   : > { %v479_v44 = vsel %vm682_vm6, %v478_v36, %v640_v51  ;;  %347 = vst [vmem:[%s664_s24] sm:$0xff] %v452_v39 }
  0xab   : > { %v486_v45 = vor.u32 %v485_v41, %v484_v40  ;;  %v494_v46 = vor.u32 %v493_v43, %v492_v42  ;;  %v453_v47 = vadd.f32 -6.0, %v479_v44 }
  0xad   : > { %v487_v48 = vsel %vm481_vm7, %v486_v45, %v642_v54  ;;  %v495_v49 = vsel %vm489_vm8, %v494_v46, %v644_v55  ;;  %348 = vst [vmem:[%s664_s24 + $0x8] sm:$0xff] %v453_v47 }
  0xae   : > { %v454_v50 = vadd.f32 -6.0, %v487_v48  ;;  %v455_v52 = vadd.f32 -6.0, %v495_v49 }
  0xb0   : > { %349 = vst [vmem:[%s664_s24 + $0x10] sm:$0xff] %v454_v50 }
  0xb1   : > { %351 = vst.msk [vmem:[%s664_s24 + $0x18] sm:$0xff] %vm350_vm4, %v455_v52 }
  0xb2 PF: > { %s12_s11 = sadd.s32 1, %s583_s11   ;;  %s722_s9 = smov %s579_s10 }
  0xb3   : > { %p9_p5 = scmp.ge.s32.totalorder %s12_s11, 4   ;;  %s723_s10 = smov %s725_s12 }
  0xb5   :  { %11 = sbr.rel (!%p9_p5) target bundleno = 2 (0x2), region = 58 }

</bundles_post_ra>
